<compile_context>
chip_gen: v7x
topology: tpu7x:2x2x1
jax: 0.10.0
libtpu: 0.0.40
codegen_flags: <defaults>
</compile_context>

<pallas_src>
import functools

import jax
import jax.numpy as jnp
from jax.experimental import pallas as pl
from jax.experimental.pallas import tpu as pltpu


_LANE = 128
_TARGET_STEP_BYTES = 4 * 1024 * 1024   # aim each grid step at ~4 MiB of x+out
_MAX_TILE_T = 8192


def _normalize_kernel(x_ref, w_ref, b_ref, o_ref, *, eps):
    # x_ref: (b_blk, C, tile_t)  input slab (original dtype)
    # w_ref: (C, C)              fused projection weight (gamma folded in), bf16
    # b_ref: (C, 1)              fused bias (W @ beta + b), f32
    # o_ref: (b_blk, C, tile_t)  output slab
    w = w_ref[...]
    bias = b_ref[...]
    # b_blk is a small static constant -> unrolled Python loop, 2-D MXU matmuls.
    for bb in range(x_ref.shape[0]):
        x = x_ref[bb].astype(jnp.float32)                       # (C, tile_t)
        # LayerNorm over the channel (sublane) axis; biased variance, f32 math.
        mean = jnp.mean(x, axis=0, keepdims=True)               # (1, tile_t)
        centered = x - mean
        var = jnp.mean(centered * centered, axis=0, keepdims=True)
        inv = jax.lax.rsqrt(var + eps)
        normed = (centered * inv).astype(jnp.bfloat16)          # bf16 MXU input
        # Fused projection on the MXU: Y = W_fused @ X_hat + b_fused.
        y = jnp.dot(w, normed, preferred_element_type=jnp.float32) + bias
        o_ref[bb] = y.astype(o_ref.dtype)


def _vmem_physical_bytes():
    try:
        return int(pltpu.get_tpu_info().vmem_capacity_bytes)
    except Exception:
        return 64 * 1024 * 1024   # conservative fallback (v7x per-TC VMEM)


def _pick_tile_t(B, T, bytes_per_col, vmem_budget, w_resident_bytes):
    """Pick the time-tile (lane) width: multiple of 128, or the full T."""
    if T <= _LANE:
        return T                                 # full-extent block (only legal choice)
    # Columns of double-buffered x+out that fit after the resident weight.
    avail = max(vmem_budget - w_resident_bytes, 2 * bytes_per_col * _LANE)
    max_cols_vmem = avail // (2 * bytes_per_col)
    # Columns needed to reach the per-step DMA byte target.
    target_cols = max(_LANE, _TARGET_STEP_BYTES // bytes_per_col)
    cap = int(min(target_cols, max_cols_vmem, _MAX_TILE_T, T))
    if B == 1 and T >= 2 * _LANE:
        cap = min(cap, T // 2)                   # >= 2 grid steps for 2-TC chips
    tile = (cap // _LANE) * _LANE
    if tile == 0:
        tile = _LANE
    # Prefer a tile that divides T (no mostly-padded trailing step), but do not
    # shrink the tile by more than ~25% to get it.
    lo = max(_LANE, (tile * 3) // 4)
    cand = tile
    while cand >= lo:
        if T % cand == 0:
            return cand
        cand -= _LANE
    return tile


def _pick_batch_block(B, T, col_budget):
    """Largest divisor of B (leaving >= 2 batch steps when B >= 2) that fits."""
    if B <= 1:
        return 1
    best = 1
    for d in range(1, B // 2 + 1):
        if B % d == 0 and d * T <= col_budget:
            best = d
    return best


def normalize_forward(x, gamma, beta, w, b, *, eps=1e-5, out_dtype=None):
    """x: (B, C, T). gamma/beta/b: (C,). w: (C, C) = proj.weight (out, in)."""
    B, C, T = x.shape
    out_dtype = x.dtype if out_dtype is None else jnp.dtype(out_dtype)

    # Fold the LayerNorm affine into the projection (once, in f32).
    w_fused = w.astype(jnp.float32) * gamma.astype(jnp.float32)[None, :]
    b_fused = (w.astype(jnp.float32) @ beta.astype(jnp.float32)
               + b.astype(jnp.float32)).reshape(C, 1)
    w_fused = w_fused.astype(jnp.bfloat16)   # halves weight DMA / resident VMEM

    x_itemsize = x.dtype.itemsize
    out_itemsize = out_dtype.itemsize
    bytes_per_col = C * (x_itemsize + out_itemsize)
    w_resident_bytes = C * C * 2 + C * 4     # bf16 weight + f32 bias (single-buffered)

    vmem_physical = _vmem_physical_bytes()
    vmem_limit = int(min(vmem_physical * 0.9, 96 * 1024 * 1024))
    tile_budget = int(vmem_physical * 0.7)

    tile_t = _pick_tile_t(B, T, bytes_per_col, tile_budget, w_resident_bytes)

    # If one tile already covers all of T, pack several batch rows per step so a
    # grid step still moves a multi-MiB slab (small-C inputs are HBM-bound).
    if tile_t == T:
        col_budget = min(_TARGET_STEP_BYTES // max(bytes_per_col, 1),
                         max(1, (tile_budget - w_resident_bytes) // (2 * bytes_per_col)))
        b_blk = _pick_batch_block(B, T, col_budget)
    else:
        b_blk = 1

    grid = (B // b_blk, pl.cdiv(T, tile_t))

    def _xo_index(bi, ti):
        return (bi, 0, ti)

    x_spec = pl.BlockSpec((b_blk, C, tile_t), _xo_index)
    o_spec = pl.BlockSpec((b_blk, C, tile_t), _xo_index)

    # Grid-invariant operands: single-buffer them (constant index_map, nothing
    # to overlap), freeing VMEM so tile_t can stay large.
    def _const_spec(shape):
        try:
            return pl.BlockSpec(shape, lambda bi, ti: (0, 0),
                                pipeline_mode=pl.Buffered(1))
        except TypeError:   # older jax without pipeline_mode: keep default buffering
            return pl.BlockSpec(shape, lambda bi, ti: (0, 0))

    w_spec = _const_spec((C, C))
    b_spec = _const_spec((C, 1))

    cost = pl.CostEstimate(
        flops=2 * B * C * C * T + 8 * B * C * T,
        transcendentals=B * T,                 # one rsqrt per (batch, time) column
        bytes_accessed=B * C * T * (x_itemsize + out_itemsize) + C * C * 2 + C * 4,
    )

    kernel = functools.partial(_normalize_kernel, eps=eps)

    return pl.pallas_call(
        kernel,
        out_shape=jax.ShapeDtypeStruct((B, C, T), out_dtype),
        grid_spec=pltpu.PrefetchScalarGridSpec(
            num_scalar_prefetch=0,
            grid=grid,
            in_specs=[x_spec, w_spec, b_spec],
            out_specs=o_spec,
        ),
        compiler_params=pltpu.CompilerParams(
            dimension_semantics=("parallel", "parallel"),
            vmem_limit_bytes=vmem_limit,
        ),
        cost_estimate=cost,
    )(x, w_fused, b_fused)


def _reference(x, gamma, beta, w, b, eps=1e-5):
    # Pure-JAX f32 reference mirroring the PyTorch forward exactly.
    xt = jnp.transpose(x, (0, 2, 1))                          # (B, T, C)
    mean = jnp.mean(xt, axis=-1, keepdims=True)
    var = jnp.mean((xt - mean) ** 2, axis=-1, keepdims=True)
    normed = (xt - mean) / jnp.sqrt(var + eps) * gamma + beta
    y = normed @ w.T + b
    return jnp.transpose(y, (0, 2, 1))                        # (B, C, T)


if __name__ == "__main__":
    key = jax.random.PRNGKey(0)
    B, C, T = 2, 32, 8

    k_x, k_g, k_be, k_w, k_b = jax.random.split(key, 5)
    x = jax.random.normal(k_x, (B, C, T), dtype=jnp.float32)

    # Non-trivial affine so the gamma/beta -> W/b folding is actually exercised.
    gamma = 1.0 + 0.1 * jax.random.normal(k_g, (C,), dtype=jnp.float32)
    beta = 0.1 * jax.random.normal(k_be, (C,), dtype=jnp.float32)
    bound = 1.0 / (C ** 0.5)
    w = jax.random.uniform(k_w, (C, C), minval=-bound, maxval=bound,
                           dtype=jnp.float32)   # proj.weight (out, in)
    b = jax.random.uniform(k_b, (C,), minval=-bound, maxval=bound,
                           dtype=jnp.float32)   # proj.bias

    out = normalize_forward(x, gamma, beta, w, b, eps=1e-5)
    out = jax.block_until_ready(out)

    ref = _reference(x, gamma, beta, w, b, eps=1e-5)
    assert out.shape == (B, C, T)
    # bf16 MXU inputs (f32 accumulation) -> loosened tolerance vs f32 reference.
    max_err = jnp.max(jnp.abs(out - ref))
    assert jnp.allclose(out, ref, atol=5e-2, rtol=5e-2), (
        f"mismatch vs reference, max abs diff = {max_err}")

    print("KERNEL_OK")
</pallas_src>

<mosaic_0001>
module attributes {stable_mosaic.version = 11 : i64} {
  func.func @_normalize_kernel(%arg0: i32, %arg1: i32, %arg2: memref<1x32x8xf32, #tpu.memory_space<vmem>>, %arg3: memref<32x32xbf16, #tpu.memory_space<vmem>>, %arg4: memref<32x1xf32, #tpu.memory_space<vmem>>, %arg5: memref<1x32x8xf32, #tpu.memory_space<vmem>>) attributes {dimension_semantics = [#tpu.dimension_semantics<parallel>, #tpu.dimension_semantics<parallel>], iteration_bounds = array<i64: 2, 1>, scalar_prefetch = 0 : i64, scratch_operands = 0 : i64, tpu.core_type = #tpu.core_type<tc>, window_params = [{transform_indices = @transform_0, window_bounds = array<i64: 1, 32, 8>}, {pipeline_mode = #tpu.pipeline_mode<synchronous>, transform_indices = @transform_1, window_bounds = array<i64: 32, 32>}, {pipeline_mode = #tpu.pipeline_mode<synchronous>, transform_indices = @transform_2, window_bounds = array<i64: 32, 1>}, {transform_indices = @transform_3, window_bounds = array<i64: 1, 32, 8>}]} {
    %c0 = arith.constant 0 : index
    %c0_0 = arith.constant 0 : index
    %0 = vector.load %arg3[%c0, %c0_0] : memref<32x32xbf16, #tpu.memory_space<vmem>>, vector<32x32xbf16>
    %c0_1 = arith.constant 0 : index
    %c0_2 = arith.constant 0 : index
    %1 = vector.load %arg4[%c0_1, %c0_2] : memref<32x1xf32, #tpu.memory_space<vmem>>, vector<32x1xf32>
    %c0_3 = arith.constant 0 : index
    %c0_4 = arith.constant 0 : index
    %c0_5 = arith.constant 0 : index
    %2 = vector.load %arg2[%c0_3, %c0_4, %c0_5] : memref<1x32x8xf32, #tpu.memory_space<vmem>>, vector<1x32x8xf32>
    %3 = vector.shape_cast %2 : vector<1x32x8xf32> to vector<32x8xf32>
    %cst = arith.constant dense<0.000000e+00> : vector<8xf32>
    %4 = vector.multi_reduction <add>, %3, %cst [0] : vector<32x8xf32> to vector<8xf32>
    %5 = vector.shape_cast %4 : vector<8xf32> to vector<1x8xf32>
    %cst_6 = arith.constant 3.200000e+01 : f32
    %6 = vector.broadcast %cst_6 : f32 to vector<1x8xf32>
    %7 = arith.divf %5, %6 : vector<1x8xf32>
    %8 = vector.broadcast %7 : vector<1x8xf32> to vector<32x8xf32>
    %9 = arith.subf %3, %8 : vector<32x8xf32>
    %10 = arith.mulf %9, %9 : vector<32x8xf32>
    %cst_7 = arith.constant dense<0.000000e+00> : vector<8xf32>
    %11 = vector.multi_reduction <add>, %10, %cst_7 [0] : vector<32x8xf32> to vector<8xf32>
    %12 = vector.shape_cast %11 : vector<8xf32> to vector<1x8xf32>
    %cst_8 = arith.constant 3.200000e+01 : f32
    %13 = vector.broadcast %cst_8 : f32 to vector<1x8xf32>
    %14 = arith.divf %12, %13 : vector<1x8xf32>
    %cst_9 = arith.constant 9.99999974E-6 : f32
    %15 = vector.broadcast %cst_9 : f32 to vector<1x8xf32>
    %16 = arith.addf %14, %15 : vector<1x8xf32>
    %17 = math.rsqrt %16 : vector<1x8xf32>
    %18 = vector.broadcast %17 : vector<1x8xf32> to vector<32x8xf32>
    %19 = arith.mulf %9, %18 : vector<32x8xf32>
    %20 = arith.truncf %19 : vector<32x8xf32> to vector<32x8xbf16>
    %cst_10 = arith.constant dense<0.000000e+00> : vector<32x8xf32>
    %21 = tpu.matmul %0, %20, %cst_10 {dimension_numbers = #tpu.dot_dimension_numbers<[1], [0], [0], [1], [0, 0, 1, 1], [], []>} : vector<32x32xbf16>, vector<32x8xbf16>, vector<32x8xf32> -> vector<32x8xf32>
    %22 = vector.broadcast %1 : vector<32x1xf32> to vector<32x8xf32>
    %23 = arith.addf %21, %22 : vector<32x8xf32>
    %c0_11 = arith.constant 0 : index
    %c0_12 = arith.constant 0 : index
    %c0_13 = arith.constant 0 : index
    %24 = vector.load %arg5[%c0_11, %c0_12, %c0_13] : memref<1x32x8xf32, #tpu.memory_space<vmem>>, vector<1x32x8xf32>
    %25 = vector.shape_cast %24 : vector<1x32x8xf32> to vector<32x8xf32>
    %26 = vector.shape_cast %23 : vector<32x8xf32> to vector<1x32x8xf32>
    tpu.vector_store %arg5[%c0_11, %c0_12, %c0_13], %26 {strides = array<i32>} : memref<1x32x8xf32, #tpu.memory_space<vmem>>, vector<1x32x8xf32>,
    return
  }
  func.func @transform_0(%arg0: i32, %arg1: i32) -> (i32, i32, i32) {
    %c0_i32 = arith.constant 0 : i32
    %c0_i32_0 = arith.constant 0 : i32
    return %arg0, %c0_i32, %arg1 : i32, i32, i32
  }
  func.func @transform_1(%arg0: i32, %arg1: i32) -> (i32, i32) {
    %c0_i32 = arith.constant 0 : i32
    %c0_i32_0 = arith.constant 0 : i32
    %c0_i32_1 = arith.constant 0 : i32
    return %c0_i32, %c0_i32_0 : i32, i32
  }
  func.func @transform_2(%arg0: i32, %arg1: i32) -> (i32, i32) {
    %c0_i32 = arith.constant 0 : i32
    %c0_i32_0 = arith.constant 0 : i32
    %c0_i32_1 = arith.constant 0 : i32
    return %c0_i32, %c0_i32_0 : i32, i32
  }
  func.func @transform_3(%arg0: i32, %arg1: i32) -> (i32, i32, i32) {
    %c0_i32 = arith.constant 0 : i32
    %c0_i32_0 = arith.constant 0 : i32
    return %arg0, %c0_i32, %arg1 : i32, i32, i32
  }
}

</mosaic_0001>

<bundles_post_ra>
// kernel: tpu_custom_call.1
= control target key start
LH: loop header
LB: loop body
LE: loop exit
PB: predicated region body
PF: predicated region fallthrough
CT: control target
= control target key end

     0   :  { %s539_s12 = smov 0   ;;  %s541_s13 = smov 0   ;;  %s611_s0 = inlined_call_operand.vmem [shape: f32[2,32,8], index: 0, kind: input, shape index: {}]   ;;  %s612_s1 = inlined_call_operand.vmem [shape: bf16[32,32], index: 1, kind: input, shape index: {}]   ;;  %s613_s2 = inlined_call_operand.vmem [shape: f32[32,1], index: 2, kind: input, shape index: {}]   ;;  %s614_s3 = inlined_call_operand.vmem [shape: f32[2,32,8], index: 3, kind: output, shape index: {}]  }
   0x1   :  { %s543_s14 = smov 0  }
   0x2 LB: > { %s25_s15 = sadd.s32 1, %s512_s13  ;;  %p438_p0 = scmp.ge.s32.totalorder %s516_s14, 1  ;;  %s516_s14 = sphi %s543_s14, %s13_s14   ;;  %s512_s13 = sphi %s541_s13, %s616_s13   ;;  %s508_s12 = sphi %s539_s12, %s615_s12  }
   0x3   : > { %p27_p1 = scmp.ge.s32.totalorder %s25_s15, 2  ;;  %p156_p2 = scmp.lt.s32.totalorder %s516_s14, 3 }
   0x5   : > { %s618_s15 = smov (%p27_p1, %s25_s15), 0  ;;  %p157_p3 = pnand %p438_p0, %p156_p2 }
   0x6   : > { %p186_p4 = scmp.lt.s32.totalorder (!%p157_p3), %s508_s12, 1  ;;  %v490_v0 = vld [vmem:[%s612_s1] sm:$0xff] (!%p157_p3)   ;;  %vm291_vm0 = vcmask (!%p157_p3), 261120   ;;  %v209_v1 = vld [vmem:[%s613_s2 + $0x10] sm:$0xff] (!%p157_p3)  ;;  %v518_v3 = vmov (!%p157_p3), 0   ;;  %vm215_vm1 = vcmask (!%p157_p3), 64512  }
   0x7   : > { %160 = sbr.rel (%p157_p3) target bundleno = 307 (0x133), region = 32  ;;  %v207_v2 = vld [vmem:[%s613_s2] sm:$0xff] (!%p157_p3)  ;;  %459 = vmatprep.mubr.msk.bf16.mxu0 (!%p157_p3), %vm291_vm0, %v490_v0  ;;  %489 = vset.pattern.permute.xlu1 (!%p157_p3), %v518_v3  ;;  %v210_v4 = vld [vmem:[%s613_s2 + $0x18] sm:$0xff] (!%p157_p3)  ;;  %v208_v5 = vld [vmem:[%s613_s2 + $0x8] sm:$0xff] (!%p157_p3) }
   0x8   : > { %488 = vset.pattern.permute.xlu0 (!%p157_p3), %v518_v3  ;;  %273 = vperm.xlu1 (!%p157_p3), %489, %v209_v1   ;;  %v491_v54 = vld [vmem:[%s612_s1 + $0x8] sm:$0xff] (!%p157_p3)  }
   0x9   : > { %263 = vperm.xlu0 (!%p157_p3), %488, %v207_v2  }
   0xc   : > { %278 = vperm.xlu1 (!%p157_p3), %489, %v210_v4  }
   0xd   : > { %268 = vperm.xlu0 (!%p157_p3), %488, %v208_v5  }
   0xe   : > { %s620_s12 = smov (!%p186_p4, %s508_s12), 1 }
   0xf   : > { %s449_s22 = sshll.u32 %s620_s12, 5 }
  0x10   : > { %s193_s25 = scalar_lea.vmem %s611_s0, %s449_s22  ;;  %s201_s7 = scalar_lea.vmem %s614_s3, %s449_s22 }
  0x11   : > { %v211_v6 = vld [vmem:[%s193_s25] sm:$0xff]  ;;  %v212_v7 = vld [vmem:[%s193_s25 + $0x8] sm:$0xff]  ;;  %v213_v8 = vld [vmem:[%s193_s25 + $0x10] sm:$0xff] }
  0x12   : > { %v214_v9 = vld [vmem:[%s193_s25 + $0x18] sm:$0xff]  ;;  %v216_v10 = vsel %vm215_vm1, %v211_v6, 0.0  ;;  %v217_v11 = vsel %vm215_vm1, %v212_v7, 0.0  ;;  %v219_v12 = vsel %vm215_vm1, %v213_v8, 0.0 }
  0x13   : > { %v218_v13 = vadd.f32 %v217_v11, %v216_v10  ;;  %v221_v14 = vsel %vm215_vm1, %v214_v9, 0.0 }
  0x15   : > { %v220_v15 = vadd.f32 %v219_v12, %v218_v13 }
  0x17   : > { %v222_v16 = vadd.f32 %v221_v14, %v220_v15 }
  0x19   : > { %v223_v17 = vrot.slane %v222_v16, 4 }
  0x1b   : > { %v224_v18 = vadd.f32 %v223_v17, %v222_v16 }
  0x1d   : > { %v225_v19 = vrot.slane %v224_v18, 2 }
  0x1f   : > { %v226_v20 = vadd.f32 %v225_v19, %v224_v18 }
  0x21   : > { %v227_v21 = vrot.slane %v226_v20, 1 }
  0x23   : > { %v228_v22 = vadd.f32 %v227_v21, %v226_v20 }
  0x25   : > { %v230_v23 = vmul.f32 0.03125, %v228_v22 }
  0x27   : > { %v231_v24 = vsub.f32 %v211_v6, %v230_v23  ;;  %v232_v25 = vsub.f32 %v212_v7, %v230_v23  ;;  %v233_v26 = vsub.f32 %v213_v8, %v230_v23  ;;  %v234_v27 = vsub.f32 %v214_v9, %v230_v23 }
  0x29   : > { %v235_v28 = vmul.f32 %v231_v24, %v231_v24  ;;  %v236_v29 = vmul.f32 %v232_v25, %v232_v25  ;;  %v237_v30 = vmul.f32 %v233_v26, %v233_v26  ;;  %v238_v31 = vmul.f32 %v234_v27, %v234_v27 }
  0x2b   : > { %v239_v32 = vsel %vm215_vm1, %v235_v28, 0.0  ;;  %v240_v33 = vsel %vm215_vm1, %v236_v29, 0.0  ;;  %v242_v34 = vsel %vm215_vm1, %v237_v30, 0.0  ;;  %v244_v36 = vsel %vm215_vm1, %v238_v31, 0.0 }
  0x2c   : > { %v241_v35 = vadd.f32 %v240_v33, %v239_v32 }
  0x2e   : > { %v243_v37 = vadd.f32 %v242_v34, %v241_v35 }
  0x30   : > { %v245_v38 = vadd.f32 %v244_v36, %v243_v37 }
  0x32   : > { %v246_v39 = vrot.slane %v245_v38, 4 }
  0x34   : > { %v247_v40 = vadd.f32 %v246_v39, %v245_v38 }
  0x36   : > { %v248_v41 = vrot.slane %v247_v40, 2 }
  0x38   : > { %v249_v42 = vadd.f32 %v248_v41, %v247_v40 }
  0x3a   : > { %v250_v43 = vrot.slane %v249_v42, 1 }
  0x3c   : > { %v251_v44 = vadd.f32 %v250_v43, %v249_v42 }
  0x3e   : > { %v252_v45 = vmul.f32 0.03125, %v251_v44 }
  0x40   : > { %v253_v46 = vadd.f32 1e-05, %v252_v45 }
  0x42   : > { %492 = vrsqrt.f32 %v253_v46 }
  0x4c   : > { %v493_v47 = vpop.eup %492 }
  0x4d   : > { %v255_v48 = vmul.f32 %v493_v47, %v231_v24  ;;  %v256_v49 = vmul.f32 %v493_v47, %v232_v25  ;;  %v257_v50 = vmul.f32 %v493_v47, %v233_v26  ;;  %v258_v51 = vmul.f32 %v493_v47, %v234_v27 }
  0x4f   : > { %v259_v52 = vpack.c.bf16 %v256_v49, %v255_v48  ;;  %v260_v53 = vpack.c.bf16 %v258_v51, %v257_v50 }
  0x51   : > { %455 = vmatprep.subr.bf16.mxu0 %v259_v52 }
  0x52   : > { %456 = vmatpush3.bf16.msra.mxu0 %v259_v52 }
  0x53   : > { %457 = vmatprep.subr.bf16.mxu0 %v260_v53 }
  0x56   : > { %458 = vmatpush3.bf16.msra.mxu0 %v260_v53 }
  0x59   : > { %460 = vmatmul.mubr.msk.bf16.vlgmr.msra.gmra.mrb[0].mxu0 %vm291_vm0, %v491_v54 }
  0x87   : > { %v274_v55 = vpop.permute.xlu1 %273 }
  0x88   : > { %v264_v56 = vpop.permute.xlu0 %263 }
  0x8b   : > { %v279_v60 = vpop.permute.xlu1 %278 }
  0x8c   : > { %v269_v63 = vpop.permute.xlu0 %268 }
 0x12c   : > { %v461_v57 = vpop.f32.mrb[0].mxu0 }
 0x12d   : > { %v341_v58 = vadd.f32 %v461_v57, %v274_v55  ;;  %v332_v59 = vpop.f32.mrb[1].mxu0 }
 0x12e   : > { %v333_v61 = vadd.f32 %v332_v59, %v264_v56  ;;  %v462_v62 = vpop.f32.mrb[2].mxu0 }
 0x12f   : > { %349 = vst.msk [vmem:[%s201_s7 + $0x10] sm:$0xff] %vm215_vm1, %v341_v58  ;;  %v344_v0 = vadd.f32 %v462_v62, %v279_v60  ;;  %v335_v1 = vpop.f32.mrb[3].mxu0 }
 0x130   : > { %347 = vst.msk [vmem:[%s201_s7] sm:$0xff] %vm215_vm1, %v333_v61  ;;  %v336_v2 = vadd.f32 %v335_v1, %v269_v63 }
 0x131   : > { %350 = vst.msk [vmem:[%s201_s7 + $0x18] sm:$0xff] %vm215_vm1, %v344_v0 }
 0x132   : > { %348 = vst.msk [vmem:[%s201_s7 + $0x8] sm:$0xff] %vm215_vm1, %v336_v2 }
 0x133 PF: > { %s13_s14 = sadd.s32 1, %s516_s14   ;;  %s615_s12 = smov %s512_s13 }
 0x134   : > { %p10_p5 = scmp.ge.s32.totalorder %s13_s14, 4   ;;  %s616_s13 = smov %s618_s15 }
 0x136   :  { %12 = sbr.rel (!%p10_p5) target bundleno = 2 (0x2), region = 62 }

</bundles_post_ra>
